<compile_context>
chip_gen: v7x
topology: tpu7x:2x2x1
jax: 0.10.0
libtpu: 0.0.40
codegen_flags: <defaults>
</compile_context>

<pallas_src>
import numpy as np
import jax
import jax.numpy as jnp
from jax import lax
from jax.experimental import pallas as pl
from jax.experimental.pallas import tpu as pltpu


def _round_up(x, m):
    return (x + m - 1) // m * m


def _choose_tile_m(m):
    """Row-tile size: big tiles for large M, grid length >= 2 for v7x."""
    m8 = _round_up(m, 8)
    if m8 <= 512:
        return m8  # single small program; overhead-dominated regime anyway
    # Large M: amortize per-step overhead with 512-1024 row tiles, but keep at
    # least two grid steps so the "parallel" axis can shard across v7x's 2 TCs.
    return min(1024, _round_up(pl.cdiv(m8, 2), 256))


# ----------------------------------------------------------------------------
# Pallas kernel: fused (Linear + action-row add, b1 folded) -> ReLU -> Linear
# ----------------------------------------------------------------------------
def _fwd_dyn_kernel(x_ref, act_ref, w1e_ref, w1a_ref, w2_ref, b2_ref, out_ref):
    # x: (TM, 128) f32, act: (TM, 1) i32, w1e: (128, 256) cdt,
    # w1a: (A_pad, 256) cdt (b1 folded in), w2: (256, 128) cdt,
    # b2: (1, 128) f32, out: (TM, 128) f32
    cdt = w1e_ref.dtype
    x = x_ref[...].astype(cdt)            # in-kernel cast: HBM read stays f32
    act = act_ref[...]                    # (TM, 1) int32
    a_pad = w1a_ref.shape[0]

    # In-kernel one-hot: (TM, 1) == (1, A_pad) -> (TM, A_pad) in compute dtype
    # (same dtype as the weights so the MXU path is not mixed-precision).
    action_ids = lax.broadcasted_iota(jnp.int32, (1, a_pad), 1)
    onehot = (act == action_ids).astype(cdt)

    h = jnp.dot(x, w1e_ref[...], preferred_element_type=jnp.float32)
    h = h + jnp.dot(onehot, w1a_ref[...], preferred_element_type=jnp.float32)
    h = jnp.maximum(h, 0.0).astype(cdt)   # ReLU in f32, then cast for 2nd MXU
    out_ref[...] = (
        jnp.dot(h, w2_ref[...], preferred_element_type=jnp.float32)
        + b2_ref[...]
    ).astype(out_ref.dtype)


def _forward_dynamics_pallas(x, act, w1e, w1a_biased, w2, b2, tile_m):
    m, e = x.shape
    a_pad, hidden = w1a_biased.shape
    out_dim = w2.shape[1]
    grid = (pl.cdiv(m, tile_m),)          # ragged last block handled by Pallas

    flops = 2 * m * (e * hidden + a_pad * hidden + hidden * out_dim)
    bytes_accessed = (
        x.size * x.dtype.itemsize + act.size * 4
        + (w1e.size + w1a_biased.size + w2.size) * w1e.dtype.itemsize
        + b2.size * 4 + m * out_dim * 4)

    return pl.pallas_call(
        _fwd_dyn_kernel,
        out_shape=jax.ShapeDtypeStruct((m, out_dim), jnp.float32),
        grid=grid,
        in_specs=[
            pl.BlockSpec((tile_m, e), lambda i: (i, 0)),        # x tiles
            pl.BlockSpec((tile_m, 1), lambda i: (i, 0)),        # action tiles
            pl.BlockSpec((e, hidden), lambda i: (0, 0)),        # W1_emb (resident)
            pl.BlockSpec((a_pad, hidden), lambda i: (0, 0)),    # W1_act+b1 (resident)
            pl.BlockSpec((hidden, out_dim), lambda i: (0, 0)),  # W2 (resident)
            pl.BlockSpec((1, out_dim), lambda i: (0, 0)),       # b2 (resident)
        ],
        out_specs=pl.BlockSpec((tile_m, out_dim), lambda i: (i, 0)),
        compiler_params=pltpu.CompilerParams(
            dimension_semantics=("parallel",)),
        cost_estimate=pl.CostEstimate(
            flops=flops, transcendentals=0, bytes_accessed=bytes_accessed),
    )(x, act, w1e, w1a_biased, w2, b2)


# ----------------------------------------------------------------------------
# Parameter init (matches torch: orthogonal weights, zero bias)
# ----------------------------------------------------------------------------
def make_params(num_actions, key):
    k1, k2 = jax.random.split(key)
    relu_gain = float(np.sqrt(2.0))  # nn.init.calculate_gain('relu')
    in_dim = 128 + num_actions

    # Orthogonal init of the full (in, out) layer, then split so the kernel
    # never sees the unaligned 135-wide K.  (Orthogonal on the transposed
    # layout is distribution-equivalent to torch's (out, in) init, not
    # bit-identical.)
    w1_full = jax.nn.initializers.orthogonal(scale=relu_gain)(
        k1, (in_dim, 256), jnp.float32)
    w1_emb = w1_full[:128]                                   # (128, 256)
    a_pad = _round_up(num_actions, 8)
    w1_act = jnp.zeros((a_pad, 256), jnp.float32)
    w1_act = w1_act.at[:num_actions].set(w1_full[128:])      # zero-padded rows

    b1 = jnp.zeros((1, 256), jnp.float32)
    w2 = jax.nn.initializers.orthogonal(scale=1.0)(k2, (256, 128), jnp.float32)
    b2 = jnp.zeros((1, 128), jnp.float32)
    return w1_emb, w1_act, b1, w2, b2


# ----------------------------------------------------------------------------
# Module wrapper
# ----------------------------------------------------------------------------
def minigrid_forward_dynamics(state_embedding, action, params,
                              compute_dtype=jnp.bfloat16):
    # state_embedding: (T, B, 128) float32 ; action: (T, B) int
    w1e, w1a, b1, w2, b2 = params
    T, B, E = state_embedding.shape
    M = T * B

    x2d = state_embedding.reshape(M, E).astype(jnp.float32)
    act2d = action.reshape(M, 1).astype(jnp.int32)

    # Fold b1 into the action-row table: onehot @ (W1_act + b1) == onehot @ W1_act + b1
    # because every one-hot row sums to exactly 1.  Cast the (tiny) weights to
    # the MXU compute dtype; activations are cast per-tile inside the kernel.
    w1a_biased = (w1a + b1).astype(compute_dtype)
    w1e_c = w1e.astype(compute_dtype)
    w2_c = w2.astype(compute_dtype)
    b2_c = b2.astype(jnp.float32)

    tile_m = _choose_tile_m(M)
    y2d = _forward_dynamics_pallas(x2d, act2d, w1e_c, w1a_biased, w2_c, b2_c,
                                   tile_m)
    return y2d.reshape(T, B, 128)


# ----------------------------------------------------------------------------
# Pure-JAX reference for sanity checking (same math as the torch module)
# ----------------------------------------------------------------------------
def _reference(state_embedding, action, params, num_actions):
    w1e, w1a, b1, w2, b2 = params
    oh = jax.nn.one_hot(action, num_actions, dtype=jnp.float32)
    h = (jnp.einsum("tbi,io->tbo", state_embedding, w1e)
         + jnp.einsum("tba,ao->tbo", oh, w1a[:num_actions])
         + b1[0])
    h = jnp.maximum(h, 0.0)
    return jnp.einsum("tbi,io->tbo", h, w2) + b2[0]


if __name__ == "__main__":
    num_actions = 7  # MiniGrid action space size
    key = jax.random.PRNGKey(0)
    k_par, k_data = jax.random.split(key)
    params = make_params(num_actions, k_par)

    # Shapes exercise: single small program, exact tile fit, and a multi-tile
    # grid with a ragged (masked) last block.
    for (T, B) in [(8, 2), (5, 3), (64, 8), (129, 7)]:
        k_data, k_emb, k_act = jax.random.split(k_data, 3)
        state_embedding = jax.random.normal(k_emb, (T, B, 128), dtype=jnp.float32)
        action = jax.random.randint(k_act, (T, B), 0, num_actions, dtype=jnp.int32)

        ref = _reference(state_embedding, action, params, num_actions)

        # Exact path (f32 MXU) -- tight tolerance.
        out_f32 = minigrid_forward_dynamics(state_embedding, action, params,
                                            compute_dtype=jnp.float32)
        out_f32 = jax.block_until_ready(out_f32)
        np.testing.assert_allclose(np.asarray(out_f32), np.asarray(ref),
                                   rtol=1e-5, atol=1e-5)

        # Fast path (bf16 MXU, f32 accumulation) -- relaxed tolerance.
        out_bf16 = minigrid_forward_dynamics(state_embedding, action, params)
        out_bf16 = jax.block_until_ready(out_bf16)
        np.testing.assert_allclose(np.asarray(out_bf16), np.asarray(ref),
                                   rtol=2e-2, atol=8e-2)

        assert out_f32.shape == (T, B, 128) and out_f32.dtype == jnp.float32
        assert out_bf16.shape == (T, B, 128) and out_bf16.dtype == jnp.float32

    print("KERNEL_OK")
</pallas_src>

<mosaic_0001>
module attributes {stable_mosaic.version = 11 : i64} {
  func.func @_fwd_dyn_kernel(%arg0: i32, %arg1: memref<16x128xf32, #tpu.memory_space<vmem>>, %arg2: memref<16x1xi32, #tpu.memory_space<vmem>>, %arg3: memref<128x256xf32, #tpu.memory_space<vmem>>, %arg4: memref<8x256xf32, #tpu.memory_space<vmem>>, %arg5: memref<256x128xf32, #tpu.memory_space<vmem>>, %arg6: memref<1x128xf32, #tpu.memory_space<vmem>>, %arg7: memref<16x128xf32, #tpu.memory_space<vmem>>) attributes {dimension_semantics = [#tpu.dimension_semantics<parallel>], iteration_bounds = array<i64: 1>, scalar_prefetch = 0 : i64, scratch_operands = 0 : i64, tpu.core_type = #tpu.core_type<tc>, window_params = [{transform_indices = @transform_0, window_bounds = array<i64: 16, 128>}, {transform_indices = @transform_1, window_bounds = array<i64: 16, 1>}, {pipeline_mode = #tpu.pipeline_mode<synchronous>, transform_indices = @transform_2, window_bounds = array<i64: 128, 256>}, {pipeline_mode = #tpu.pipeline_mode<synchronous>, transform_indices = @transform_3, window_bounds = array<i64: 8, 256>}, {pipeline_mode = #tpu.pipeline_mode<synchronous>, transform_indices = @transform_4, window_bounds = array<i64: 256, 128>}, {pipeline_mode = #tpu.pipeline_mode<synchronous>, transform_indices = @transform_5, window_bounds = array<i64: 1, 128>}, {transform_indices = @transform_6, window_bounds = array<i64: 16, 128>}]} {
    %c0 = arith.constant 0 : index
    %c0_0 = arith.constant 0 : index
    %0 = vector.load %arg1[%c0, %c0_0] : memref<16x128xf32, #tpu.memory_space<vmem>>, vector<16x128xf32>
    %c0_1 = arith.constant 0 : index
    %c0_2 = arith.constant 0 : index
    %1 = vector.load %arg2[%c0_1, %c0_2] : memref<16x1xi32, #tpu.memory_space<vmem>>, vector<16x1xi32>
    %2 = tpu.iota {dimensions = array<i32: 1>} : vector<1x8xi32>
    %3 = vector.broadcast %1 : vector<16x1xi32> to vector<16x8xi32>
    %4 = vector.broadcast %2 : vector<1x8xi32> to vector<16x8xi32>
    %5 = arith.cmpi eq, %3, %4 : vector<16x8xi32>
    %6 = arith.extui %5 : vector<16x8xi1> to vector<16x8xi32>
    %7 = arith.sitofp %6 : vector<16x8xi32> to vector<16x8xf32>
    %c0_3 = arith.constant 0 : index
    %c0_4 = arith.constant 0 : index
    %8 = vector.load %arg3[%c0_3, %c0_4] : memref<128x256xf32, #tpu.memory_space<vmem>>, vector<128x256xf32>
    %cst = arith.constant dense<0.000000e+00> : vector<16x256xf32>
    %9 = tpu.matmul %0, %8, %cst {dimension_numbers = #tpu.dot_dimension_numbers<[1], [0], [0], [1], [0, 0, 1, 1], [], []>} : vector<16x128xf32>, vector<128x256xf32>, vector<16x256xf32> -> vector<16x256xf32>
    %c0_5 = arith.constant 0 : index
    %c0_6 = arith.constant 0 : index
    %10 = vector.load %arg4[%c0_5, %c0_6] : memref<8x256xf32, #tpu.memory_space<vmem>>, vector<8x256xf32>
    %cst_7 = arith.constant dense<0.000000e+00> : vector<16x256xf32>
    %11 = tpu.matmul %7, %10, %cst_7 {dimension_numbers = #tpu.dot_dimension_numbers<[1], [0], [0], [1], [0, 0, 1, 1], [], []>} : vector<16x8xf32>, vector<8x256xf32>, vector<16x256xf32> -> vector<16x256xf32>
    %12 = arith.addf %9, %11 : vector<16x256xf32>
    %cst_8 = arith.constant 0.000000e+00 : f32
    %13 = vector.broadcast %cst_8 : f32 to vector<16x256xf32>
    %14 = arith.maximumf %12, %13 : vector<16x256xf32>
    %c0_9 = arith.constant 0 : index
    %c0_10 = arith.constant 0 : index
    %15 = vector.load %arg5[%c0_9, %c0_10] : memref<256x128xf32, #tpu.memory_space<vmem>>, vector<256x128xf32>
    %cst_11 = arith.constant dense<0.000000e+00> : vector<16x128xf32>
    %16 = tpu.matmul %14, %15, %cst_11 {dimension_numbers = #tpu.dot_dimension_numbers<[1], [0], [0], [1], [0, 0, 1, 1], [], []>} : vector<16x256xf32>, vector<256x128xf32>, vector<16x128xf32> -> vector<16x128xf32>
    %c0_12 = arith.constant 0 : index
    %c0_13 = arith.constant 0 : index
    %17 = vector.load %arg6[%c0_12, %c0_13] : memref<1x128xf32, #tpu.memory_space<vmem>>, vector<1x128xf32>
    %18 = vector.broadcast %17 : vector<1x128xf32> to vector<16x128xf32>
    %19 = arith.addf %16, %18 : vector<16x128xf32>
    %c0_14 = arith.constant 0 : index
    %c0_15 = arith.constant 0 : index
    %20 = vector.load %arg7[%c0_14, %c0_15] : memref<16x128xf32, #tpu.memory_space<vmem>>, vector<16x128xf32>
    tpu.vector_store %arg7[%c0_14, %c0_15], %19 {strides = array<i32>} : memref<16x128xf32, #tpu.memory_space<vmem>>, vector<16x128xf32>,
    return
  }
  func.func @transform_0(%arg0: i32) -> (i32, i32) {
    %c0_i32 = arith.constant 0 : i32
    %c0_i32_0 = arith.constant 0 : i32
    return %arg0, %c0_i32 : i32, i32
  }
  func.func @transform_1(%arg0: i32) -> (i32, i32) {
    %c0_i32 = arith.constant 0 : i32
    %c0_i32_0 = arith.constant 0 : i32
    return %arg0, %c0_i32 : i32, i32
  }
  func.func @transform_2(%arg0: i32) -> (i32, i32) {
    %c0_i32 = arith.constant 0 : i32
    %c0_i32_0 = arith.constant 0 : i32
    %c0_i32_1 = arith.constant 0 : i32
    return %c0_i32, %c0_i32_0 : i32, i32
  }
  func.func @transform_3(%arg0: i32) -> (i32, i32) {
    %c0_i32 = arith.constant 0 : i32
    %c0_i32_0 = arith.constant 0 : i32
    %c0_i32_1 = arith.constant 0 : i32
    return %c0_i32, %c0_i32_0 : i32, i32
  }
  func.func @transform_4(%arg0: i32) -> (i32, i32) {
    %c0_i32 = arith.constant 0 : i32
    %c0_i32_0 = arith.constant 0 : i32
    %c0_i32_1 = arith.constant 0 : i32
    return %c0_i32, %c0_i32_0 : i32, i32
  }
  func.func @transform_5(%arg0: i32) -> (i32, i32) {
    %c0_i32 = arith.constant 0 : i32
    %c0_i32_0 = arith.constant 0 : i32
    %c0_i32_1 = arith.constant 0 : i32
    return %c0_i32, %c0_i32_0 : i32, i32
  }
  func.func @transform_6(%arg0: i32) -> (i32, i32) {
    %c0_i32 = arith.constant 0 : i32
    %c0_i32_0 = arith.constant 0 : i32
    return %arg0, %c0_i32 : i32, i32
  }
}

</mosaic_0001>

<bundles_post_ra>
// kernel: tpu_custom_call.1
= control target key start
LH: loop header
LB: loop body
LE: loop exit
PB: predicated region body
PF: predicated region fallthrough
CT: control target
= control target key end

     0   :  { %11 = vsyncpa [#allocation3], 0  ;;  %s759_s0 = inlined_call_operand.vmem [shape: f32[16,128], index: 0, kind: input, shape index: {}]   ;;  %s760_s1 = inlined_call_operand.vmem [shape: s32[16,1], index: 1, kind: input, shape index: {}]   ;;  %s761_s2 = inlined_call_operand.hbm [shape: f32[128,256], index: 2, kind: input, shape index: {}]   ;;  %s762_s3 = inlined_call_operand.hbm [shape: f32[8,256], index: 3, kind: input, shape index: {}]   ;;  %s763_s4 = inlined_call_operand.hbm [shape: f32[256,128], index: 4, kind: input, shape index: {}]   ;;  %s764_s5 = inlined_call_operand.vmem [shape: f32[1,128], index: 5, kind: input, shape index: {}]   ;;  %s765_s6 = inlined_call_operand.hbm [shape: f32[16,128], index: 6, kind: output, shape index: {}]  }
   0x1   :  { %12 = vsyncpa [#allocation6], 0 }
   0x2   :  { %13 = vsyncpa [#allocation4], 0  ;;  %s630_s21 = smov [#allocation5]   ;;  %s631_s23 = smov [#allocation2]  }
   0x3   :  { %s36_s22 = sshll.u32 %s630_s21, 4  ;;  %s23_s24 = sshll.u32 %s631_s23, 4  ;;  %s37_s22 = int_to_ptr.vmem [resolvable:$true] %s36_s22  ;;  %s675_s24 = int_to_ptr.vmem [resolvable:$true] %s23_s24 }
   0x4   :  { %s536_s27 = scalar_lea.hbm %s762_s3, 256 }
   0x5   :  { %p537_p0 = scmp.ne.s32.totalorder %s762_s3, %s536_s27  ;;  %p540_p1 = scmp.lt.u32.totalorder %s536_s27, %s762_s3 }
   0x7   :  { %p542_p2 = pnand %p540_p1, %p537_p0 }
   0x9   :  { %545 = shalt.err (!%p542_p2)
}
   0xa   :  { %s546_s8 = scalar_lea.vmem %s37_s22, 256  ;;  %p551_p4 = scmp.lt.s32.totalorder %s37_s22, %s37_s22 }
   0xb   :  { %p547_p3 = scmp.ne.s32.totalorder %s37_s22, %s546_s8  ;;  %p552_p5 = scmp.lt.s32.totalorder %s546_s8, %s546_s8 }
   0xd   :  { %p553_p6 = por %p552_p5, %p551_p4 }
   0xf   :  { %p554_p7 = pnand %p553_p6, %p547_p3 }
  0x11   :  { %557 = shalt.err (!%p554_p7)
}
  0x12   :  { %39 = dma.hbm_to_vmem [thread:$0]  %s762_s3, 256, %s37_s22, [#allocation6]  }
  0x13   :  { %s558_s13 = scalar_lea.hbm %s761_s2, 4096 }
  0x14   :  { %p559_p8 = scmp.ne.s32.totalorder %s761_s2, %s558_s13  ;;  %p562_p9 = scmp.lt.u32.totalorder %s558_s13, %s761_s2 }
  0x16   :  { %p564_p10 = pnand %p562_p9, %p559_p8 }
  0x18   :  { %567 = shalt.err (!%p564_p10)
}
  0x19   :  { %s568_s18 = scalar_lea.vmem %s675_s24, 4096  ;;  %p573_p12 = scmp.lt.s32.totalorder %s675_s24, %s675_s24 }
  0x1a   :  { %p569_p11 = scmp.ne.s32.totalorder %s675_s24, %s568_s18  ;;  %p574_p13 = scmp.lt.s32.totalorder %s568_s18, %s568_s18 }
  0x1c   :  { %p575_p0 = por %p574_p13, %p573_p12 }
  0x1e   :  { %p576_p1 = pnand %p575_p0, %p569_p11 }
  0x20   :  { %579 = shalt.err (!%p576_p1)
}
  0x21   :  { %s632_s3 = smov 256   ;;  %s633_s19 = smov 16  }
  0x22   :  { %29 = dma.hbm_to_vmem [thread:$0]  %s761_s2, 4096, %s675_s24, [#allocation3], %s632_s3, %s632_s3, %s633_s19  }
  0x23   :  { %s634_s22 = smov [#allocation7]   ;;  %s580_s27 = scalar_lea.hbm %s763_s4, 4096 }
  0x24   :  { %s45_s23 = sshll.u32 %s634_s22, 4  ;;  %p581_p2 = scmp.ne.s32.totalorder %s763_s4, %s580_s27  ;;  %s46_s23 = int_to_ptr.vmem [resolvable:$true] %s45_s23 }
  0x25   :  { %p584_p3 = scmp.lt.u32.totalorder %s580_s27, %s763_s4 }
  0x27   :  { %p586_p4 = pnand %p584_p3, %p581_p2 }
  0x29   :  { %589 = shalt.err (!%p586_p4)
}
  0x2a   :  { %s590_s8 = scalar_lea.vmem %s46_s23, 4096  ;;  %p595_p6 = scmp.lt.s32.totalorder %s46_s23, %s46_s23 }
  0x2b   :  { %p591_p5 = scmp.ne.s32.totalorder %s46_s23, %s590_s8  ;;  %p596_p7 = scmp.lt.s32.totalorder %s590_s8, %s590_s8 }
  0x2d   :  { %p597_p8 = por %p596_p7, %p595_p6 }
  0x2f   :  { %p598_p9 = pnand %p597_p8, %p591_p5 }
  0x31   :  { %601 = shalt.err (!%p598_p9)
}
  0x32   :  { %s635_s2 = smov 128   ;;  %s636_s24 = smov 8  }
  0x33   :  { %51 = dma.hbm_to_vmem [thread:$0]  %s763_s4, 4096, %s46_s23, [#allocation6], %s635_s2, %s635_s2, %s636_s24  }
  0x34   :  { %624 = dma.done.wait [#allocation3], 4096  }
  0x35   :  { %625 = vsyncadd [#allocation3], 4294963200 }
  0x36   :  { %626 = dma.done.wait [#allocation6], 4352  }
  0x37   :  { %627 = vsyncadd [#allocation6], 4294962944  ;;  %v637_v0 = vmov 0   ;;  %v638_v1 = vmov 0.0   ;;  %v65_v2 = vld [vmem:[%s760_s1] sm:$0xff]  ;;  %v114_v3 = vld [vmem:[#allocation5 + $0x8] sm:$0xff]  ;;  %v67_v51 = vlaneseq }
  0x38   :  { %535 = vset.pattern.permute.xlu0 %v637_v0  ;;  %186 = vmatprep.mubr.f32.mxu0 %v638_v1  ;;  %v113_v4 = vld [vmem:[#allocation5] sm:$0xff]  ;;  %v82_v5 = vld [vmem:[#allocation2 + $0x8] sm:$0xff]  ;;  %v84_v6 = vld [vmem:[#allocation2 + $0x18] sm:$0xff]  ;;  %vm115_vm0 = vcmask 64512   ;;  %s639_s18 = smov [#allocation8]  }
  0x39   :  { %70 = vperm.xlu0 %535, %v65_v2   ;;  %122 = vmatprep.subr.mxu0 %v114_v3  ;;  %v66_v7 = vld [vmem:[%s760_s1 + $0x8] sm:$0xff]  ;;  %v457_v8 = vpack.c.bf16 %v84_v6, %v82_v5  ;;  %v296_v9 = vld [vmem:[#allocation7 + $0x80] sm:$0xff]  ;;  %v297_v10 = vld [vmem:[#allocation7 + $0x88] sm:$0xff]  ;;  %v68_v52 = vand.u32 127, %v67_v51  ;;  %s401_s3 = sshll.u32 %s639_s18, 4  ;;  %s402_s3 = int_to_ptr.vmem [resolvable:$true] %s401_s3 }
  0x3a   :  { %123 = vmatpush1.msra.mxu0 %v113_v4  ;;  %v280_v11 = vld [vmem:[#allocation7] sm:$0xff]  ;;  %v489_v12 = vpack.c.bf16 %v297_v10, %v296_v9  ;;  %v281_v13 = vld [vmem:[#allocation7 + $0x8] sm:$0xff]  ;;  %v298_v14 = vld [vmem:[#allocation7 + $0x90] sm:$0xff]  ;;  %s602_s19 = scalar_lea.vmem %s402_s3, 256  ;;  %p607_p11 = scmp.lt.s32.totalorder %s402_s3, %s402_s3 }
  0x3b   :  { %458 = vmatprep.subr.bf16.mxu0 %v457_v8  ;;  %v299_v15 = vld [vmem:[#allocation7 + $0x98] sm:$0xff]  ;;  %v491_v16 = vpack.c.bf16 %v281_v13, %v280_v11  ;;  %v282_v18 = vld [vmem:[#allocation7 + $0x10] sm:$0xff]  ;;  %v300_v20 = vld [vmem:[#allocation7 + $0xa0] sm:$0xff]  ;;  %p603_p10 = scmp.ne.s32.totalorder %s402_s3, %s602_s19  ;;  %p608_p12 = scmp.lt.s32.totalorder %s602_s19, %s602_s19 }
  0x3c   :  { %v493_v17 = vpack.c.bf16 %v299_v15, %v298_v14  ;;  %v283_v19 = vld [vmem:[#allocation7 + $0x18] sm:$0xff]  ;;  %490 = vmatprep.subr.bf16.mxu1 %v489_v12  ;;  %v301_v21 = vld [vmem:[#allocation7 + $0xa8] sm:$0xff]  ;;  %v284_v24 = vld [vmem:[#allocation7 + $0x20] sm:$0xff] }
  0x3d   :  { %73 = vperm.xlu0 %535, %v66_v7   ;;  %492 = vmatpush3.bf16.msra.mxu1 %v491_v16  ;;  %v495_v22 = vpack.c.bf16 %v283_v19, %v282_v18  ;;  %v497_v23 = vpack.c.bf16 %v301_v21, %v300_v20  ;;  %v285_v25 = vld [vmem:[#allocation7 + $0x28] sm:$0xff]  ;;  %v302_v26 = vld [vmem:[#allocation7 + $0xb0] sm:$0xff]  ;;  %v303_v27 = vld [vmem:[#allocation7 + $0xb8] sm:$0xff]  ;;  %p609_p13 = por %p608_p12, %p607_p11 }
  0x3e   :  { %494 = vmatprep.subr.bf16.mxu1 %v493_v17  ;;  %v499_v28 = vpack.c.bf16 %v285_v25, %v284_v24  ;;  %v501_v29 = vpack.c.bf16 %v303_v27, %v302_v26  ;;  %v286_v30 = vld [vmem:[#allocation7 + $0x30] sm:$0xff]  ;;  %v287_v31 = vld [vmem:[#allocation7 + $0x38] sm:$0xff]  ;;  %v304_v32 = vld [vmem:[#allocation7 + $0xc0] sm:$0xff] }
  0x3f   :  { %v305_v33 = vld [vmem:[#allocation7 + $0xc8] sm:$0xff]  ;;  %v503_v34 = vpack.c.bf16 %v287_v31, %v286_v30  ;;  %v288_v36 = vld [vmem:[#allocation7 + $0x40] sm:$0xff]  ;;  %v306_v38 = vld [vmem:[#allocation7 + $0xd0] sm:$0xff]  ;;  %p610_p0 = pnand %p609_p13, %p603_p10 }
  0x40   :  { %v505_v35 = vpack.c.bf16 %v305_v33, %v304_v32  ;;  %v289_v37 = vld [vmem:[#allocation7 + $0x48] sm:$0xff]  ;;  %v307_v39 = vld [vmem:[#allocation7 + $0xd8] sm:$0xff]  ;;  %v290_v42 = vld [vmem:[#allocation7 + $0x50] sm:$0xff] }
  0x41   :  { %496 = vmatpush3.bf16.msra.mxu1 %v495_v22  ;;  %v507_v40 = vpack.c.bf16 %v289_v37, %v288_v36  ;;  %v509_v41 = vpack.c.bf16 %v307_v39, %v306_v38  ;;  %v291_v43 = vld [vmem:[#allocation7 + $0x58] sm:$0xff]  ;;  %v308_v44 = vld [vmem:[#allocation7 + $0xe0] sm:$0xff]  ;;  %v309_v45 = vld [vmem:[#allocation7 + $0xe8] sm:$0xff] }
  0x42   :  { %498 = vmatprep.subr.bf16.mxu1 %v497_v23  ;;  %v511_v46 = vpack.c.bf16 %v291_v43, %v290_v42  ;;  %v513_v47 = vpack.c.bf16 %v309_v45, %v308_v44  ;;  %v292_v48 = vld [vmem:[#allocation7 + $0x60] sm:$0xff]  ;;  %v293_v49 = vld [vmem:[#allocation7 + $0x68] sm:$0xff]  ;;  %v81_v53 = vld [vmem:[#allocation2] sm:$0xff] }
  0x43   :  { %v515_v50 = vpack.c.bf16 %v293_v49, %v292_v48  ;;  %v83_v54 = vld [vmem:[#allocation2 + $0x10] sm:$0xff]  ;;  %v86_v55 = vld [vmem:[#allocation2 + $0x28] sm:$0xff]  ;;  %v88_v56 = vld [vmem:[#allocation2 + $0x38] sm:$0xff] }
  0x44   :  { %v459_v58 = vpack.c.bf16 %v83_v54, %v81_v53  ;;  %v461_v59 = vpack.c.bf16 %v88_v56, %v86_v55  ;;  %v85_v60 = vld [vmem:[#allocation2 + $0x20] sm:$0xff]  ;;  %v87_v61 = vld [vmem:[#allocation2 + $0x30] sm:$0xff]  ;;  %v90_v63 = vld [vmem:[#allocation2 + $0x48] sm:$0xff] }
  0x45   :  { %500 = vmatpush3.bf16.msra.mxu1 %v499_v28  ;;  %v92_v0 = vld [vmem:[#allocation2 + $0x58] sm:$0xff]  ;;  %v463_v3 = vpack.c.bf16 %v87_v61, %v85_v60  ;;  %v89_v5 = vld [vmem:[#allocation2 + $0x40] sm:$0xff]  ;;  %v91_v6 = vld [vmem:[#allocation2 + $0x50] sm:$0xff] }
  0x46   :  { %502 = vmatprep.subr.bf16.mxu1 %v501_v29  ;;  %v465_v4 = vpack.c.bf16 %v92_v0, %v90_v63  ;;  %v94_v8 = vld [vmem:[#allocation2 + $0x68] sm:$0xff]  ;;  %v96_v9 = vld [vmem:[#allocation2 + $0x78] sm:$0xff]  ;;  %v467_v10 = vpack.c.bf16 %v91_v6, %v89_v5  ;;  %v93_v12 = vld [vmem:[#allocation2 + $0x60] sm:$0xff] }
  0x47   :  { %v469_v11 = vpack.c.bf16 %v96_v9, %v94_v8  ;;  %v95_v13 = vld [vmem:[#allocation2 + $0x70] sm:$0xff]  ;;  %v98_v14 = vld [vmem:[#allocation2 + $0x88] sm:$0xff]  ;;  %v100_v15 = vld [vmem:[#allocation2 + $0x98] sm:$0xff] }
  0x48   :  { %v471_v16 = vpack.c.bf16 %v95_v13, %v93_v12  ;;  %v473_v17 = vpack.c.bf16 %v100_v15, %v98_v14  ;;  %v97_v18 = vld [vmem:[#allocation2 + $0x80] sm:$0xff]  ;;  %v99_v19 = vld [vmem:[#allocation2 + $0x90] sm:$0xff]  ;;  %v102_v20 = vld [vmem:[#allocation2 + $0xa8] sm:$0xff] }
  0x49   :  { %504 = vmatpush3.bf16.msra.mxu1 %v503_v34  ;;  %v104_v21 = vld [vmem:[#allocation2 + $0xb8] sm:$0xff]  ;;  %v475_v22 = vpack.c.bf16 %v99_v19, %v97_v18  ;;  %v101_v24 = vld [vmem:[#allocation2 + $0xa0] sm:$0xff]  ;;  %v103_v25 = vld [vmem:[#allocation2 + $0xb0] sm:$0xff] }
  0x4a   :  { %506 = vmatprep.subr.bf16.mxu1 %v505_v35  ;;  %v477_v23 = vpack.c.bf16 %v104_v21, %v102_v20  ;;  %v106_v26 = vld [vmem:[#allocation2 + $0xc8] sm:$0xff]  ;;  %v108_v27 = vld [vmem:[#allocation2 + $0xd8] sm:$0xff]  ;;  %v479_v28 = vpack.c.bf16 %v103_v25, %v101_v24  ;;  %v105_v30 = vld [vmem:[#allocation2 + $0xc0] sm:$0xff] }
  0x4b   :  { %v481_v29 = vpack.c.bf16 %v108_v27, %v106_v26  ;;  %v107_v31 = vld [vmem:[#allocation2 + $0xd0] sm:$0xff]  ;;  %v110_v32 = vld [vmem:[#allocation2 + $0xe8] sm:$0xff]  ;;  %v112_v33 = vld [vmem:[#allocation2 + $0xf8] sm:$0xff] }
  0x4c   :  { %v483_v34 = vpack.c.bf16 %v107_v31, %v105_v30  ;;  %v485_v35 = vpack.c.bf16 %v112_v33, %v110_v32  ;;  %v109_v36 = vld [vmem:[#allocation2 + $0xe0] sm:$0xff]  ;;  %v111_v37 = vld [vmem:[#allocation2 + $0xf0] sm:$0xff]  ;;  %v311_v42 = vld [vmem:[#allocation7 + $0xf8] sm:$0xff] }
  0x4d   :  { %508 = vmatpush3.bf16.msra.mxu1 %v507_v40  ;;  %v487_v38 = vpack.c.bf16 %v111_v37, %v109_v36  ;;  %v63_v39 = vld [vmem:[%s759_s0] sm:$0xff]  ;;  %v64_v40 = vld [vmem:[%s759_s0 + $0x8] sm:$0xff] }
  0x4e   :  { %510 = vmatprep.subr.bf16.mxu1 %v509_v41  ;;  %v310_v41 = vld [vmem:[#allocation7 + $0xf0] sm:$0xff]  ;;  %v295_v45 = vld [vmem:[#allocation7 + $0x78] sm:$0xff] }
  0x4f   :  { %v517_v43 = vpack.c.bf16 %v311_v42, %v310_v41  ;;  %v294_v44 = vld [vmem:[#allocation7 + $0x70] sm:$0xff] }
  0x50   :  { %v418_v55 = vld [vmem:[%s764_s5] ss:$0 sm:$0xff] }
  0x51   :  { %512 = vmatpush3.bf16.msra.mxu1 %v511_v46  ;;  %v519_v46 = vpack.c.bf16 %v295_v45, %v294_v44 }
  0x52   :  { %514 = vmatprep.subr.bf16.mxu1 %v513_v47 }
  0x55   :  { %516 = vmatpush3.bf16.msra.mxu1 %v515_v50 }
  0x56   :  { %518 = vmatprep.subr.bf16.mxu1 %v517_v43 }
  0x59   :  { %520 = vmatpush3.bf16.msra.mxu1 %v519_v46 }
  0xb8   :  { %v71_v57 = vpop.permute.xlu0 %70 }
  0xb9   :  { %vm75_vm1 = vcmp.eq.s32.totalorder %v71_v57, %v68_v52 }
  0xba   :  { %v414_v62 = vsel %vm75_vm1, 1.0, %v638_v1 }
  0xbb   :  { %416 = vmatmul.mubr.msk.f32.vlgmr.msra.gmra.mrb[0].mxu0 %vm115_vm0, %v414_v62 }
  0xbc   :  { %460 = vmatpush1.bf16.msra.mxu0 %v459_v58  ;;  %v74_v2 = vpop.permute.xlu0 %73  ;;  %192 = vmatprep.mubr.f32.mxu0 %v638_v1 }
  0xbd   :  { %vm76_vm2 = vcmp.eq.s32.totalorder %v74_v2, %v68_v52  ;;  %462 = vmatprep.subr.bf16.mxu0 %v461_v59 }
  0xbe   :  { %v415_v7 = vsel %vm76_vm2, 1.0, %v638_v1 }
  0xbf   :  { %417 = vmatmul.mubr.msk.f32.gmra.mrb[2].mxu0 %vm115_vm0, %v415_v7 }
  0xc0   :  { %464 = vmatpush1.bf16.msra.mxu0 %v463_v3  ;;  %263 = vmatprep.mubr.f32.mxu0 %v638_v1 }
  0xc1   :  { %466 = vmatprep.subr.bf16.mxu0 %v465_v4 }
  0xc4   :  { %468 = vmatpush1.bf16.msra.mxu0 %v467_v10 }
  0xc5   :  { %470 = vmatprep.subr.bf16.mxu0 %v469_v11 }
  0xc8   :  { %472 = vmatpush1.bf16.msra.mxu0 %v471_v16 }
  0xc9   :  { %474 = vmatprep.subr.bf16.mxu0 %v473_v17 }
  0xcc   :  { %476 = vmatpush1.bf16.msra.mxu0 %v475_v22 }
  0xcd   :  { %478 = vmatprep.subr.bf16.mxu0 %v477_v23 }
  0xd0   :  { %480 = vmatpush1.bf16.msra.mxu0 %v479_v28 }
  0xd1   :  { %482 = vmatprep.subr.bf16.mxu0 %v481_v29 }
  0xd4   :  { %484 = vmatpush1.bf16.msra.mxu0 %v483_v34 }
  0xd5   :  { %486 = vmatprep.subr.bf16.mxu0 %v485_v35 }
  0xd8   :  { %488 = vmatpush1.bf16.msra.mxu0 %v487_v38 }
  0xdb   :  { %264 = vmatmul.mubr.f32.vlgmr.msra.gmra.mrb[0].mxu0 %v63_v39 }
  0xdc   :  { %269 = vmatprep.mubr.f32.mxu0 %v638_v1 }
  0xdf   :  { %270 = vmatmul.mubr.f32.gmra.mrb[2].mxu0 %v64_v40 }
 0x1ae   :  { %v265_v47 = vpop.f32.mrb[0].mxu0 }
 0x1af   :  { %v267_v48 = vpop.f32.mrb[1].mxu0  ;;  %v276_v50 = vmax.f32 %v265_v47, 0.0 }
 0x1b0   :  { %v277_v49 = vmax.f32 %v267_v48, 0.0 }
 0x1b2   :  { %v271_v51 = vpop.f32.mrb[2].mxu0  ;;  %383 = vmatprep.mubr.f32.mxu1 %v277_v49 }
 0x1b3   :  { %v273_v1 = vpop.f32.mrb[3].mxu0  ;;  %384 = vmatmul.mubr.f32.vlgmr.msra.gmra.mrb[0].mxu1 %v276_v50  ;;  %v278_v53 = vmax.f32 %v271_v51, 0.0 }
 0x1b4   :  { %v279_v52 = vmax.f32 %v273_v1, 0.0 }
 0x1b6   :  { %388 = vmatprep.mubr.f32.mxu1 %v279_v52 }
 0x1b7   :  { %389 = vmatmul.mubr.f32.gmra.mrb[2].mxu1 %v278_v53 }
 0x286   :  { %v451_v54 = vpop.f32.mrb[0].mxu1 }
 0x287   :  { %v452_v56 = vpop.f32.mrb[1].mxu1 }
 0x288   :  { %v453_v57 = vadd.f32 %v452_v56, %v451_v54 }
 0x28a   :  { %v386_v58 = vadd.f32 %v453_v57, %v418_v55  ;;  %v454_v59 = vpop.f32.mrb[2].mxu1 }
 0x28b   :  { %v455_v60 = vpop.f32.mrb[3].mxu1 }
 0x28c   :  { %394 = vst [vmem:[#allocation8] sm:$0xff] %v386_v58  ;;  %v456_v61 = vadd.f32 %v455_v60, %v454_v59 }
 0x28e   :  { %v391_v62 = vadd.f32 %v456_v61, %v418_v55 }
 0x290   :  { %395 = vst [vmem:[#allocation8 + $0x8] sm:$0xff] %v391_v62 }
 0x291   :  { %613 = shalt.err (!%p610_p0)
}
 0x292   :  { %s614_s21 = scalar_lea.hbm %s765_s6, 256 }
 0x293   :  { %p615_p1 = scmp.ne.s32.totalorder %s765_s6, %s614_s21  ;;  %p618_p2 = scmp.lt.u32.totalorder %s614_s21, %s765_s6 }
 0x295   :  { %p620_p3 = pnand %p618_p2, %p615_p1 }
 0x297   :  { %623 = shalt.err (!%p620_p3)
}
 0x298   :  { %407 = dma.vmem_to_hbm [thread:$0]  %s402_s3, 256, %s765_s6, [#allocation4], %s635_s2, %s635_s2, %s636_s24  }
 0x299   :  { %628 = dma.done.wait [#allocation4], 256  }
 0x29a   :  { %629 = vsyncadd [#allocation4], 4294967040 }
 0x29b   :  { %411 = vsyncpa [#allocation3], 1 }
 0x29c   :  { %412 = vsyncpa [#allocation6], 1 }
 0x29d   :  { %413 = vsyncpa [#allocation4], 1 }

</bundles_post_ra>
